<compile_context>
chip_gen: v7x
topology: tpu7x:2x2x1
jax: 0.10.0
libtpu: 0.0.40
codegen_flags: <defaults>
</compile_context>

<pallas_src>
import functools

import jax
import jax.numpy as jnp
from jax.experimental import pallas as pl
from jax.experimental.pallas import tpu as pltpu


def _round_up(x, m):
    return ((x + m - 1) // m) * m


# ----------------------------------------------------------------------------
# Fused kernel: one grid step == one Controller.forward() step
# ----------------------------------------------------------------------------
def _controller_unroll_kernel(
    dec_ref,       # SMEM [num_steps] int32  per-step decoder index (used by index_maps)
    tok_ref,       # VMEM [1, Bp, 1]  int32  this step's token ids
    ext_ref,       # VMEM [1, Bp, Hp] f32    this step's external embedding (zeros otherwise)
    hx0_ref,       # VMEM [Bp, Hp]    f32    initial hidden state
    cx0_ref,       # VMEM [Bp, Hp]    f32    initial cell state
    enc_ref,       # VMEM [Tp, Hp]    f32    encoder (embedding) table, resident
    wcat_ref,      # VMEM [2Hp, 4Hp]  f32    stacked [W_ih; W_hh] (pre-transposed), resident
    bcat_ref,      # VMEM [1, 4Hp]    f32    combined LSTM bias, resident
    wdec_ref,      # VMEM [1, Hp, Sp] f32    this step's decoder weight (pre-transposed)
    bdec_ref,      # VMEM [1, 1, Sp]  f32    this step's decoder bias
    logits_ref,    # out  [1, Bp, Sp] f32    per-step logits (lane-dense)
    hx_out_ref,    # out  [Bp, Hp]    f32    final hidden state
    cx_out_ref,    # out  [Bp, Hp]    f32    final cell state
    h_sc,          # scratch [Bp, Hp] f32    recurrent hidden carry
    c_sc,          # scratch [Bp, Hp] f32    recurrent cell carry
    *,
    hid_pad: int,
    n_tok_pad: int,
    mode: str,
    tanh_c: float,
    inv_temp: float,
):
    del dec_ref  # only consumed by the BlockSpec index_maps
    s = pl.program_id(0)
    Hp = hid_pad
    Bp = h_sc.shape[0]

    @pl.when(s == 0)
    def _init():
        h_sc[...] = hx0_ref[...]
        c_sc[...] = cx0_ref[...]

    # ---- embedding gather fused into the kernel: one-hot @ table on the MXU.
    # "is_embed" steps use a token id that points at a guaranteed-zero row, and
    # the external embedding arrives via ext_ref, so a plain add blends both.
    tok_col = tok_ref[0]                                              # [Bp, 1] int32
    lane_ids = jax.lax.broadcasted_iota(jnp.int32, (Bp, n_tok_pad), 1)
    one_hot = (lane_ids == tok_col).astype(jnp.float32)               # [Bp, Tp]
    embed = jnp.dot(one_hot, enc_ref[...], preferred_element_type=jnp.float32)
    embed = embed + ext_ref[0]                                        # [Bp, Hp]

    h_prev = h_sc[...]
    c_prev = c_sc[...]

    # ---- LSTMCell: single fused gate matmul on [x, h] (lane-aligned concat).
    xh = jnp.concatenate([embed, h_prev], axis=1)                     # [Bp, 2Hp]
    gates = jnp.dot(xh, wcat_ref[...], preferred_element_type=jnp.float32) + bcat_ref[...]

    # PyTorch gate order (i, f, g, o); each gate sits in its own 128-lane block.
    i_g = jax.nn.sigmoid(gates[:, 0 * Hp:1 * Hp])
    f_g = jax.nn.sigmoid(gates[:, 1 * Hp:2 * Hp])
    g_g = jnp.tanh(gates[:, 2 * Hp:3 * Hp])
    o_g = jax.nn.sigmoid(gates[:, 3 * Hp:4 * Hp])

    c_new = f_g * c_prev + i_g * g_g
    h_new = o_g * jnp.tanh(c_new)

    # ---- decoder (per-step weights selected via scalar-prefetched index_map).
    logits = jnp.dot(h_new, wdec_ref[0], preferred_element_type=jnp.float32) + bdec_ref[0]
    if mode == "train":
        logits = tanh_c * jnp.tanh(logits)
    elif mode == "derive":
        logits = logits * inv_temp      # trace-time reciprocal, VPU multiply

    logits_ref[0] = logits
    h_sc[...] = h_new
    c_sc[...] = c_new

    @pl.when(s == pl.num_programs(0) - 1)
    def _finalize():
        hx_out_ref[...] = h_new
        cx_out_ref[...] = c_new


# ----------------------------------------------------------------------------
# Controller module (parameter container + forward), mirroring the PyTorch one
# ----------------------------------------------------------------------------
class Args:
    def __init__(self):
        self.network_type = "rnn"
        self.shared_rnn_activations = ["tanh", "ReLU", "identity", "sigmoid"]
        self.num_blocks = 4
        self.controller_hid = 32
        self.mode = "train"
        self.tanh_c = 2.5
        self.softmax_temperature = 5.0
        self.cuda = False


class ControllerPallas:
    def __init__(self, args, key):
        self.args = args
        if args.network_type == "rnn":
            self.num_tokens = [len(args.shared_rnn_activations)]
            for idx in range(args.num_blocks):
                self.num_tokens += [idx + 1, len(args.shared_rnn_activations)]
            self.func_names = args.shared_rnn_activations
        elif args.network_type == "cnn":
            self.num_tokens = [len(args.shared_cnn_types), args.num_blocks]
            self.func_names = args.shared_cnn_types
        else:
            raise ValueError(args.network_type)

        H = args.controller_hid
        T = sum(self.num_tokens)
        nd = len(self.num_tokens)
        init_range = 0.1

        keys = jax.random.split(key, 5 + nd)
        u = lambda k, shape: jax.random.uniform(k, shape, jnp.float32,
                                                -init_range, init_range)

        # ---- unpadded parameters (PyTorch layout) — also used by the JAX reference
        self.enc_w = u(keys[0], (T, H))                 # nn.Embedding weight
        self.w_ih = u(keys[1], (4 * H, H))              # LSTMCell.weight_ih
        self.w_hh = u(keys[2], (4 * H, H))              # LSTMCell.weight_hh
        self.b_ih = u(keys[3], (4 * H,))
        self.b_hh = u(keys[4], (4 * H,))
        self.dec_w = [u(keys[5 + i], (s, H)) for i, s in enumerate(self.num_tokens)]
        self.dec_b = [jnp.zeros((s,), jnp.float32) for s in self.num_tokens]  # bias.fill_(0)

        # ---- padded / fused parameters for the Pallas kernel
        self.H = H
        self.Hp = _round_up(H, 128)                      # lane-aligned gate blocks
        self.Sp = _round_up(max(self.num_tokens), 128)   # lane-dense logits
        self.Tp = _round_up(T + 1, 8)                    # +1 guarantees an all-zero row
        self.zero_tok = T                                # token id of the zero row
        self.num_dec = nd
        Hp, Sp, Tp = self.Hp, self.Sp, self.Tp

        enc_p = jnp.zeros((Tp, Hp), jnp.float32).at[:T, :H].set(self.enc_w)

        wcat = jnp.zeros((2 * Hp, 4 * Hp), jnp.float32)
        bcat = jnp.zeros((1, 4 * Hp), jnp.float32)
        for g in range(4):
            wcat = wcat.at[:H, g * Hp:g * Hp + H].set(self.w_ih[g * H:(g + 1) * H, :].T)
            wcat = wcat.at[Hp:Hp + H, g * Hp:g * Hp + H].set(self.w_hh[g * H:(g + 1) * H, :].T)
            bcat = bcat.at[0, g * Hp:g * Hp + H].set(
                self.b_ih[g * H:(g + 1) * H] + self.b_hh[g * H:(g + 1) * H])

        wdec = jnp.zeros((nd, Hp, Sp), jnp.float32)
        bdec = jnp.zeros((nd, 1, Sp), jnp.float32)
        for d, s in enumerate(self.num_tokens):
            wdec = wdec.at[d, :H, :s].set(self.dec_w[d].T)
            bdec = bdec.at[d, 0, :s].set(self.dec_b[d])

        self.enc_p, self.wcat, self.bcat = enc_p, wcat, bcat
        self.wdec_p, self.bdec_p = wdec, bdec
        self._call_cache = {}
        # TODO(synk): on v6e/v7x the resident weights could be stored in bf16
        # (keep f32 accumulation); kept f32 here for exact parity with the ref.

    # ---------------- pallas_call builder ----------------
    def _build_call(self, num_steps, Bp):
        Hp, Sp, Tp = self.Hp, self.Sp, self.Tp
        kernel = functools.partial(
            _controller_unroll_kernel,
            hid_pad=Hp,
            n_tok_pad=Tp,
            mode=self.args.mode,
            tanh_c=float(self.args.tanh_c),
            inv_temp=1.0 / float(self.args.softmax_temperature),
        )
        grid_spec = pltpu.PrefetchScalarGridSpec(
            num_scalar_prefetch=1,                 # per-step decoder index in SMEM
            grid=(num_steps,),
            in_specs=[
                pl.BlockSpec((1, Bp, 1), lambda s, dec: (s, 0, 0)),        # token ids
                pl.BlockSpec((1, Bp, Hp), lambda s, dec: (s, 0, 0)),       # external embed
                pl.BlockSpec((Bp, Hp), lambda s, dec: (0, 0)),             # hx0 (resident)
                pl.BlockSpec((Bp, Hp), lambda s, dec: (0, 0)),             # cx0 (resident)
                pl.BlockSpec((Tp, Hp), lambda s, dec: (0, 0)),             # encoder (resident)
                pl.BlockSpec((2 * Hp, 4 * Hp), lambda s, dec: (0, 0)),     # W_cat (resident)
                pl.BlockSpec((1, 4 * Hp), lambda s, dec: (0, 0)),          # b_cat (resident)
                pl.BlockSpec((1, Hp, Sp), lambda s, dec: (dec[s], 0, 0)),  # decoder W (per step)
                pl.BlockSpec((1, 1, Sp), lambda s, dec: (dec[s], 0, 0)),   # decoder b (per step)
            ],
            out_specs=(
                pl.BlockSpec((1, Bp, Sp), lambda s, dec: (s, 0, 0)),       # logits (lane-dense)
                pl.BlockSpec((Bp, Hp), lambda s, dec: (0, 0)),             # hx out
                pl.BlockSpec((Bp, Hp), lambda s, dec: (0, 0)),             # cx out
            ),
            scratch_shapes=[
                pltpu.VMEM((Bp, Hp), jnp.float32),                          # h carry
                pltpu.VMEM((Bp, Hp), jnp.float32),                          # c carry
            ],
        )
        call = pl.pallas_call(
            kernel,
            out_shape=(
                jax.ShapeDtypeStruct((num_steps, Bp, Sp), jnp.float32),
                jax.ShapeDtypeStruct((Bp, Hp), jnp.float32),
                jax.ShapeDtypeStruct((Bp, Hp), jnp.float32),
            ),
            grid_spec=grid_spec,
            compiler_params=pltpu.CompilerParams(
                dimension_semantics=("arbitrary",)),   # LSTM recurrence is serial
        )
        # TODO(synk): on v7x a leading "parallel" axis over independent samples
        # would use the second TensorCore; a single sequence is inherently serial.
        return jax.jit(call)

    def _get_call(self, num_steps, Bp):
        key = (num_steps, Bp)
        if key not in self._call_cache:
            self._call_cache[key] = self._build_call(num_steps, Bp)
        return self._call_cache[key]

    def _run(self, dec_idx, tok_ids, ext_embed, hidden):
        """dec_idx [S] int32, tok_ids [S,B] int32, ext_embed [S,B,H] f32."""
        num_steps, B = tok_ids.shape
        H, Hp = self.H, self.Hp
        Bp = _round_up(max(B, 8), 8)
        hx, cx = hidden

        tok_p = jnp.zeros((num_steps, Bp, 1), jnp.int32).at[:, :B, 0].set(tok_ids)
        ext_p = jnp.zeros((num_steps, Bp, Hp), jnp.float32).at[:, :B, :H].set(ext_embed)
        hx_p = jnp.zeros((Bp, Hp), jnp.float32).at[:B, :H].set(hx)
        cx_p = jnp.zeros((Bp, Hp), jnp.float32).at[:B, :H].set(cx)

        call = self._get_call(num_steps, Bp)
        logits_p, hxp, cxp = call(dec_idx, tok_p, ext_p, hx_p, cx_p,
                                  self.enc_p, self.wcat, self.bcat,
                                  self.wdec_p, self.bdec_p)
        return logits_p, (hxp[:B, :H], cxp[:B, :H])

    # ---------------- public API (mirrors the PyTorch module) ----------------
    def init_hidden(self, batch_size):
        H = self.args.controller_hid
        z = jnp.zeros((batch_size, H), jnp.float32)
        return (z, z)

    def static_input(self, batch_size):
        return jnp.zeros((batch_size, self.args.controller_hid), jnp.float32)

    def forward(self, inputs, hidden, block_idx, is_embed):
        """Single Controller.forward() step (runs the fused kernel with 1 step)."""
        H = self.args.controller_hid
        if is_embed:
            B = inputs.shape[0]
            ext = inputs.reshape(1, B, H).astype(jnp.float32)
            tok = jnp.full((1, B), self.zero_tok, jnp.int32)   # gathers a zero row
        else:
            tok = inputs.astype(jnp.int32).reshape(1, -1)
            B = tok.shape[1]
            ext = jnp.zeros((1, B, H), jnp.float32)
        dec = jnp.asarray([block_idx], dtype=jnp.int32)
        logits_p, new_hidden = self._run(dec, tok, ext, hidden)
        logits = logits_p[0, :B, :self.num_tokens[block_idx]]
        return logits, new_hidden

    def forward_unrolled(self, token_ids, block_indices, hidden,
                         is_embed_mask=None, ext_embeds=None):
        """Fused unroll: all steps in ONE pallas_call.
        token_ids [S,B] int32; block_indices list[int]; steps flagged in
        is_embed_mask use ext_embeds[t] (default zeros == ENAS static input)."""
        num_steps = len(block_indices)
        B = token_ids.shape[1]
        H = self.args.controller_hid
        if is_embed_mask is None:
            is_embed_mask = [False] * num_steps
        if ext_embeds is None:
            ext_embeds = jnp.zeros((num_steps, B, H), jnp.float32)
        mask = jnp.asarray(is_embed_mask, dtype=bool).reshape(num_steps, 1)
        tok = jnp.where(mask, self.zero_tok, token_ids.astype(jnp.int32))
        ext = jnp.where(mask.reshape(num_steps, 1, 1), ext_embeds, 0.0)
        dec = jnp.asarray(block_indices, dtype=jnp.int32)
        logits_p, new_hidden = self._run(dec, tok, ext, hidden)
        logits_list = [logits_p[t, :B, :self.num_tokens[b]]
                       for t, b in enumerate(block_indices)]
        return logits_list, new_hidden

    # TODO(synk): Controller.sample() — the multinomial draw feeding the next
    # step's token and the python defaultdict DAG construction are host-side
    # control flow; the fused kernel covers the teacher-forced unroll (given a
    # token schedule), not on-the-fly sampling.


# ----------------------------------------------------------------------------
# Pure-JAX reference (PyTorch semantics, unpadded) for correctness checks
# ----------------------------------------------------------------------------
def _reference_forward(ctrl, embed, hidden, block_idx):
    hx, cx = hidden
    H = ctrl.args.controller_hid
    gates = embed @ ctrl.w_ih.T + ctrl.b_ih + hx @ ctrl.w_hh.T + ctrl.b_hh
    i = jax.nn.sigmoid(gates[:, 0:H])
    f = jax.nn.sigmoid(gates[:, H:2 * H])
    g = jnp.tanh(gates[:, 2 * H:3 * H])
    o = jax.nn.sigmoid(gates[:, 3 * H:4 * H])
    c_new = f * cx + i * g
    h_new = o * jnp.tanh(c_new)
    logits = h_new @ ctrl.dec_w[block_idx].T + ctrl.dec_b[block_idx]
    if ctrl.args.mode == "train":
        logits = ctrl.args.tanh_c * jnp.tanh(logits)
    elif ctrl.args.mode == "derive":
        logits = logits / ctrl.args.softmax_temperature
    return logits, (h_new, c_new)


if __name__ == "__main__":
    args = Args()
    key = jax.random.PRNGKey(0)
    ctrl = ControllerPallas(args, key)

    batch = 2
    H = args.controller_hid
    close = lambda a, b: jnp.allclose(a, b, atol=1e-4, rtol=1e-4)

    # ---------- single-step forward() (API parity with the PyTorch module) ----------
    hidden = ctrl.init_hidden(batch)
    inputs0 = ctrl.static_input(batch)
    logits0, hidden1 = ctrl.forward(inputs0, hidden, block_idx=0, is_embed=True)
    token_ids = jnp.array([1, 3], dtype=jnp.int32)
    logits1, hidden2 = ctrl.forward(token_ids, hidden1, block_idx=1, is_embed=False)
    jax.block_until_ready((logits0, logits1, hidden2))

    ref_h = ctrl.init_hidden(batch)
    ref_logits0, ref_h = _reference_forward(ctrl, inputs0, ref_h, 0)
    ref_embed1 = jnp.take(ctrl.enc_w, token_ids, axis=0)
    ref_logits1, ref_h = _reference_forward(ctrl, ref_embed1, ref_h, 1)

    assert close(logits0, ref_logits0), "logits0 mismatch"
    assert close(logits1, ref_logits1), "logits1 mismatch"
    assert close(hidden2[0], ref_h[0]), "hx mismatch"
    assert close(hidden2[1], ref_h[1]), "cx mismatch"

    # ---------- fused unroll: full sample()-style schedule in ONE pallas_call ----------
    num_steps = 2 * (args.num_blocks - 1) + 1          # same step count as sample()
    block_indices = list(range(num_steps))
    tok_sched = jax.random.randint(jax.random.PRNGKey(1), (num_steps, batch),
                                   0, sum(ctrl.num_tokens)).astype(jnp.int32)
    is_embed_mask = [True] + [False] * (num_steps - 1)  # step 0 uses the static zero input

    logits_steps, hidden_f = ctrl.forward_unrolled(
        tok_sched, block_indices, ctrl.init_hidden(batch), is_embed_mask=is_embed_mask)
    jax.block_until_ready((logits_steps, hidden_f))

    rh = ctrl.init_hidden(batch)
    for t, b_idx in enumerate(block_indices):
        if is_embed_mask[t]:
            emb = jnp.zeros((batch, H), jnp.float32)
        else:
            emb = jnp.take(ctrl.enc_w, tok_sched[t], axis=0)
        rl, rh = _reference_forward(ctrl, emb, rh, b_idx)
        assert close(logits_steps[t], rl), f"fused step {t} logits mismatch"
    assert close(hidden_f[0], rh[0]), "fused hx mismatch"
    assert close(hidden_f[1], rh[1]), "fused cx mismatch"

    print("KERNEL_OK")
</pallas_src>

<mosaic_0001>
module attributes {stable_mosaic.version = 11 : i64} {
  func.func @_controller_unroll_kernel(%arg0: i32, %arg1: memref<1xi32, #tpu.memory_space<smem>>, %arg2: memref<1x8x1xi32, #tpu.memory_space<vmem>>, %arg3: memref<1x8x128xf32, #tpu.memory_space<vmem>>, %arg4: memref<8x128xf32, #tpu.memory_space<vmem>>, %arg5: memref<8x128xf32, #tpu.memory_space<vmem>>, %arg6: memref<32x128xf32, #tpu.memory_space<vmem>>, %arg7: memref<256x512xf32, #tpu.memory_space<vmem>>, %arg8: memref<1x512xf32, #tpu.memory_space<vmem>>, %arg9: memref<1x128x128xf32, #tpu.memory_space<vmem>>, %arg10: memref<1x1x128xf32, #tpu.memory_space<vmem>>, %arg11: memref<1x8x128xf32, #tpu.memory_space<vmem>>, %arg12: memref<8x128xf32, #tpu.memory_space<vmem>>, %arg13: memref<8x128xf32, #tpu.memory_space<vmem>>, %arg14: memref<8x128xf32, #tpu.memory_space<vmem>>, %arg15: memref<8x128xf32, #tpu.memory_space<vmem>>) attributes {dimension_semantics = [#tpu.dimension_semantics<arbitrary>], iteration_bounds = array<i64: 1>, scalar_prefetch = 1 : i64, scratch_operands = 2 : i64, tpu.core_type = #tpu.core_type<tc>, window_params = [{transform_indices = @transform_0, window_bounds = array<i64: 1, 8, 1>}, {transform_indices = @transform_1, window_bounds = array<i64: 1, 8, 128>}, {pipeline_mode = #tpu.pipeline_mode<synchronous>, transform_indices = @transform_2, window_bounds = array<i64: 8, 128>}, {pipeline_mode = #tpu.pipeline_mode<synchronous>, transform_indices = @transform_3, window_bounds = array<i64: 8, 128>}, {pipeline_mode = #tpu.pipeline_mode<synchronous>, transform_indices = @transform_4, window_bounds = array<i64: 32, 128>}, {pipeline_mode = #tpu.pipeline_mode<synchronous>, transform_indices = @transform_5, window_bounds = array<i64: 256, 512>}, {pipeline_mode = #tpu.pipeline_mode<synchronous>, transform_indices = @transform_6, window_bounds = array<i64: 1, 512>}, {transform_indices = @transform_7, window_bounds = array<i64: 1, 128, 128>}, {transform_indices = @transform_8, window_bounds = array<i64: 1, 1, 128>}, {transform_indices = @transform_9, window_bounds = array<i64: 1, 8, 128>}, {pipeline_mode = #tpu.pipeline_mode<synchronous>, transform_indices = @transform_10, window_bounds = array<i64: 8, 128>}, {pipeline_mode = #tpu.pipeline_mode<synchronous>, transform_indices = @transform_11, window_bounds = array<i64: 8, 128>}]} {
    %c0_i32 = arith.constant 0 : i32
    %0 = arith.cmpi eq, %arg0, %c0_i32 : i32
    %1 = arith.extui %0 : i1 to i32
    %c0_i32_0 = arith.constant 0 : i32
    %2 = arith.cmpi ne, %1, %c0_i32_0 : i32
    scf.if %2 {
      %c0_37 = arith.constant 0 : index
      %c0_38 = arith.constant 0 : index
      %66 = vector.load %arg4[%c0_37, %c0_38] : memref<8x128xf32, #tpu.memory_space<vmem>>, vector<8x128xf32>
      %c0_39 = arith.constant 0 : index
      %c0_40 = arith.constant 0 : index
      %67 = vector.load %arg14[%c0_39, %c0_40] : memref<8x128xf32, #tpu.memory_space<vmem>>, vector<8x128xf32>
      tpu.vector_store %arg14[%c0_39, %c0_40], %66 {strides = array<i32>} : memref<8x128xf32, #tpu.memory_space<vmem>>, vector<8x128xf32>,
      %c0_41 = arith.constant 0 : index
      %c0_42 = arith.constant 0 : index
      %68 = vector.load %arg5[%c0_41, %c0_42] : memref<8x128xf32, #tpu.memory_space<vmem>>, vector<8x128xf32>
      %c0_43 = arith.constant 0 : index
      %c0_44 = arith.constant 0 : index
      %69 = vector.load %arg15[%c0_43, %c0_44] : memref<8x128xf32, #tpu.memory_space<vmem>>, vector<8x128xf32>
      tpu.vector_store %arg15[%c0_43, %c0_44], %68 {strides = array<i32>} : memref<8x128xf32, #tpu.memory_space<vmem>>, vector<8x128xf32>,
    } else {
    }
    %c0 = arith.constant 0 : index
    %c0_1 = arith.constant 0 : index
    %c0_2 = arith.constant 0 : index
    %3 = vector.load %arg2[%c0, %c0_1, %c0_2] : memref<1x8x1xi32, #tpu.memory_space<vmem>>, vector<1x8x1xi32>
    %4 = vector.shape_cast %3 : vector<1x8x1xi32> to vector<8x1xi32>
    %5 = tpu.iota {dimensions = array<i32: 1>} : vector<8x32xi32>
    %6 = vector.broadcast %4 : vector<8x1xi32> to vector<8x32xi32>
    %7 = arith.cmpi eq, %5, %6 : vector<8x32xi32>
    %8 = arith.extui %7 : vector<8x32xi1> to vector<8x32xi32>
    %9 = arith.sitofp %8 : vector<8x32xi32> to vector<8x32xf32>
    %c0_3 = arith.constant 0 : index
    %c0_4 = arith.constant 0 : index
    %10 = vector.load %arg6[%c0_3, %c0_4] : memref<32x128xf32, #tpu.memory_space<vmem>>, vector<32x128xf32>
    %cst = arith.constant dense<0.000000e+00> : vector<8x128xf32>
    %11 = tpu.matmul %9, %10, %cst {dimension_numbers = #tpu.dot_dimension_numbers<[1], [0], [0], [1], [0, 0, 1, 1], [], []>} : vector<8x32xf32>, vector<32x128xf32>, vector<8x128xf32> -> vector<8x128xf32>
    %c0_5 = arith.constant 0 : index
    %c0_6 = arith.constant 0 : index
    %c0_7 = arith.constant 0 : index
    %12 = vector.load %arg3[%c0_5, %c0_6, %c0_7] : memref<1x8x128xf32, #tpu.memory_space<vmem>>, vector<1x8x128xf32>
    %13 = vector.shape_cast %12 : vector<1x8x128xf32> to vector<8x128xf32>
    %14 = arith.addf %11, %13 : vector<8x128xf32>
    %c0_8 = arith.constant 0 : index
    %c0_9 = arith.constant 0 : index
    %15 = vector.load %arg14[%c0_8, %c0_9] : memref<8x128xf32, #tpu.memory_space<vmem>>, vector<8x128xf32>
    %c0_10 = arith.constant 0 : index
    %c0_11 = arith.constant 0 : index
    %16 = vector.load %arg15[%c0_10, %c0_11] : memref<8x128xf32, #tpu.memory_space<vmem>>, vector<8x128xf32>
    %17 = tpu.concatenate %14, %15 in 1 : vector<8x128xf32>, vector<8x128xf32> -> vector<8x256xf32>
    %c0_12 = arith.constant 0 : index
    %c0_13 = arith.constant 0 : index
    %18 = vector.load %arg7[%c0_12, %c0_13] : memref<256x512xf32, #tpu.memory_space<vmem>>, vector<256x512xf32>
    %cst_14 = arith.constant dense<0.000000e+00> : vector<8x512xf32>
    %19 = tpu.matmul %17, %18, %cst_14 {dimension_numbers = #tpu.dot_dimension_numbers<[1], [0], [0], [1], [0, 0, 1, 1], [], []>} : vector<8x256xf32>, vector<256x512xf32>, vector<8x512xf32> -> vector<8x512xf32>
    %c0_15 = arith.constant 0 : index
    %c0_16 = arith.constant 0 : index
    %20 = vector.load %arg8[%c0_15, %c0_16] : memref<1x512xf32, #tpu.memory_space<vmem>>, vector<1x512xf32>
    %21 = vector.broadcast %20 : vector<1x512xf32> to vector<8x512xf32>
    %22 = arith.addf %19, %21 : vector<8x512xf32>
    %23 = vector.extract_strided_slice %22 {offsets = [0, 0], sizes = [8, 128], strides = [1, 1]} : vector<8x512xf32> to vector<8x128xf32>
    %24 = arith.negf %23 : vector<8x128xf32>
    %25 = math.exp %24 : vector<8x128xf32>
    %cst_17 = arith.constant 1.000000e+00 : f32
    %26 = vector.broadcast %cst_17 : f32 to vector<8x128xf32>
    %27 = arith.addf %26, %25 : vector<8x128xf32>
    %28 = arith.divf %26, %27 : vector<8x128xf32>
    %29 = vector.extract_strided_slice %22 {offsets = [0, 128], sizes = [8, 128], strides = [1, 1]} : vector<8x512xf32> to vector<8x128xf32>
    %30 = arith.negf %29 : vector<8x128xf32>
    %31 = math.exp %30 : vector<8x128xf32>
    %cst_18 = arith.constant 1.000000e+00 : f32
    %32 = vector.broadcast %cst_18 : f32 to vector<8x128xf32>
    %33 = arith.addf %32, %31 : vector<8x128xf32>
    %34 = arith.divf %32, %33 : vector<8x128xf32>
    %35 = vector.extract_strided_slice %22 {offsets = [0, 256], sizes = [8, 128], strides = [1, 1]} : vector<8x512xf32> to vector<8x128xf32>
    %36 = math.tanh %35 : vector<8x128xf32>
    %37 = vector.extract_strided_slice %22 {offsets = [0, 384], sizes = [8, 128], strides = [1, 1]} : vector<8x512xf32> to vector<8x128xf32>
    %38 = arith.negf %37 : vector<8x128xf32>
    %39 = math.exp %38 : vector<8x128xf32>
    %cst_19 = arith.constant 1.000000e+00 : f32
    %40 = vector.broadcast %cst_19 : f32 to vector<8x128xf32>
    %41 = arith.addf %40, %39 : vector<8x128xf32>
    %42 = arith.divf %40, %41 : vector<8x128xf32>
    %43 = arith.mulf %34, %16 : vector<8x128xf32>
    %44 = arith.mulf %28, %36 : vector<8x128xf32>
    %45 = arith.addf %43, %44 : vector<8x128xf32>
    %46 = math.tanh %45 : vector<8x128xf32>
    %47 = arith.mulf %42, %46 : vector<8x128xf32>
    %c0_20 = arith.constant 0 : index
    %c0_21 = arith.constant 0 : index
    %c0_22 = arith.constant 0 : index
    %48 = vector.load %arg9[%c0_20, %c0_21, %c0_22] : memref<1x128x128xf32, #tpu.memory_space<vmem>>, vector<1x128x128xf32>
    %49 = vector.shape_cast %48 : vector<1x128x128xf32> to vector<128x128xf32>
    %cst_23 = arith.constant dense<0.000000e+00> : vector<8x128xf32>
    %50 = tpu.matmul %47, %49, %cst_23 {dimension_numbers = #tpu.dot_dimension_numbers<[1], [0], [0], [1], [0, 0, 1, 1], [], []>} : vector<8x128xf32>, vector<128x128xf32>, vector<8x128xf32> -> vector<8x128xf32>
    %c0_24 = arith.constant 0 : index
    %c0_25 = arith.constant 0 : index
    %c0_26 = arith.constant 0 : index
    %51 = vector.load %arg10[%c0_24, %c0_25, %c0_26] : memref<1x1x128xf32, #tpu.memory_space<vmem>>, vector<1x1x128xf32>
    %52 = vector.shape_cast %51 : vector<1x1x128xf32> to vector<1x128xf32>
    %53 = vector.broadcast %52 : vector<1x128xf32> to vector<8x128xf32>
    %54 = arith.addf %50, %53 : vector<8x128xf32>
    %55 = math.tanh %54 : vector<8x128xf32>
    %cst_27 = arith.constant 2.500000e+00 : f32
    %56 = vector.broadcast %cst_27 : f32 to vector<8x128xf32>
    %57 = arith.mulf %56, %55 : vector<8x128xf32>
    %c0_28 = arith.constant 0 : index
    %c0_29 = arith.constant 0 : index
    %c0_30 = arith.constant 0 : index
    %58 = vector.load %arg11[%c0_28, %c0_29, %c0_30] : memref<1x8x128xf32, #tpu.memory_space<vmem>>, vector<1x8x128xf32>
    %59 = vector.shape_cast %58 : vector<1x8x128xf32> to vector<8x128xf32>
    %60 = vector.shape_cast %57 : vector<8x128xf32> to vector<1x8x128xf32>
    tpu.vector_store %arg11[%c0_28, %c0_29, %c0_30], %60 {strides = array<i32>} : memref<1x8x128xf32, #tpu.memory_space<vmem>>, vector<1x8x128xf32>,
    %c0_31 = arith.constant 0 : index
    %c0_32 = arith.constant 0 : index
    %61 = vector.load %arg14[%c0_31, %c0_32] : memref<8x128xf32, #tpu.memory_space<vmem>>, vector<8x128xf32>
    tpu.vector_store %arg14[%c0_31, %c0_32], %47 {strides = array<i32>} : memref<8x128xf32, #tpu.memory_space<vmem>>, vector<8x128xf32>,
    %c0_33 = arith.constant 0 : index
    %c0_34 = arith.constant 0 : index
    %62 = vector.load %arg15[%c0_33, %c0_34] : memref<8x128xf32, #tpu.memory_space<vmem>>, vector<8x128xf32>
    tpu.vector_store %arg15[%c0_33, %c0_34], %45 {strides = array<i32>} : memref<8x128xf32, #tpu.memory_space<vmem>>, vector<8x128xf32>,
    %c0_i32_35 = arith.constant 0 : i32
    %63 = arith.cmpi eq, %arg0, %c0_i32_35 : i32
    %64 = arith.extui %63 : i1 to i32
    %c0_i32_36 = arith.constant 0 : i32
    %65 = arith.cmpi ne, %64, %c0_i32_36 : i32
    scf.if %65 {
      %c0_37 = arith.constant 0 : index
      %c0_38 = arith.constant 0 : index
      %66 = vector.load %arg12[%c0_37, %c0_38] : memref<8x128xf32, #tpu.memory_space<vmem>>, vector<8x128xf32>
      tpu.vector_store %arg12[%c0_37, %c0_38], %47 {strides = array<i32>} : memref<8x128xf32, #tpu.memory_space<vmem>>, vector<8x128xf32>,
      %c0_39 = arith.constant 0 : index
      %c0_40 = arith.constant 0 : index
      %67 = vector.load %arg13[%c0_39, %c0_40] : memref<8x128xf32, #tpu.memory_space<vmem>>, vector<8x128xf32>
      tpu.vector_store %arg13[%c0_39, %c0_40], %45 {strides = array<i32>} : memref<8x128xf32, #tpu.memory_space<vmem>>, vector<8x128xf32>,
    } else {
    }
    return
  }
  func.func @transform_0(%arg0: i32, %arg1: memref<1xi32, #tpu.memory_space<smem>>) -> (i32, i32, i32) {
    %c0_i32 = arith.constant 0 : i32
    %c0_i32_0 = arith.constant 0 : i32
    %c0_i32_1 = arith.constant 0 : i32
    return %arg0, %c0_i32, %c0_i32_0 : i32, i32, i32
  }
  func.func @transform_1(%arg0: i32, %arg1: memref<1xi32, #tpu.memory_space<smem>>) -> (i32, i32, i32) {
    %c0_i32 = arith.constant 0 : i32
    %c0_i32_0 = arith.constant 0 : i32
    %c0_i32_1 = arith.constant 0 : i32
    return %arg0, %c0_i32, %c0_i32_0 : i32, i32, i32
  }
  func.func @transform_2(%arg0: i32, %arg1: memref<1xi32, #tpu.memory_space<smem>>) -> (i32, i32) {
    %c0_i32 = arith.constant 0 : i32
    %c0_i32_0 = arith.constant 0 : i32
    %c0_i32_1 = arith.constant 0 : i32
    return %c0_i32, %c0_i32_0 : i32, i32
  }
  func.func @transform_3(%arg0: i32, %arg1: memref<1xi32, #tpu.memory_space<smem>>) -> (i32, i32) {
    %c0_i32 = arith.constant 0 : i32
    %c0_i32_0 = arith.constant 0 : i32
    %c0_i32_1 = arith.constant 0 : i32
    return %c0_i32, %c0_i32_0 : i32, i32
  }
  func.func @transform_4(%arg0: i32, %arg1: memref<1xi32, #tpu.memory_space<smem>>) -> (i32, i32) {
    %c0_i32 = arith.constant 0 : i32
    %c0_i32_0 = arith.constant 0 : i32
    %c0_i32_1 = arith.constant 0 : i32
    return %c0_i32, %c0_i32_0 : i32, i32
  }
  func.func @transform_5(%arg0: i32, %arg1: memref<1xi32, #tpu.memory_space<smem>>) -> (i32, i32) {
    %c0_i32 = arith.constant 0 : i32
    %c0_i32_0 = arith.constant 0 : i32
    %c0_i32_1 = arith.constant 0 : i32
    return %c0_i32, %c0_i32_0 : i32, i32
  }
  func.func @transform_6(%arg0: i32, %arg1: memref<1xi32, #tpu.memory_space<smem>>) -> (i32, i32) {
    %c0_i32 = arith.constant 0 : i32
    %c0_i32_0 = arith.constant 0 : i32
    %c0_i32_1 = arith.constant 0 : i32
    return %c0_i32, %c0_i32_0 : i32, i32
  }
  func.func @transform_7(%arg0: i32, %arg1: memref<1xi32, #tpu.memory_space<smem>>) -> (i32, i32, i32) {
    %0 = arith.index_cast %arg0 : i32 to index
    %1 = memref.load %arg1[%0] : memref<1xi32, #tpu.memory_space<smem>>
    %c0_i32 = arith.constant 0 : i32
    %c0_i32_0 = arith.constant 0 : i32
    %c0_i32_1 = arith.constant 0 : i32
    return %1, %c0_i32, %c0_i32_0 : i32, i32, i32
  }
  func.func @transform_8(%arg0: i32, %arg1: memref<1xi32, #tpu.memory_space<smem>>) -> (i32, i32, i32) {
    %0 = arith.index_cast %arg0 : i32 to index
    %1 = memref.load %arg1[%0] : memref<1xi32, #tpu.memory_space<smem>>
    %c0_i32 = arith.constant 0 : i32
    %c0_i32_0 = arith.constant 0 : i32
    %c0_i32_1 = arith.constant 0 : i32
    return %1, %c0_i32, %c0_i32_0 : i32, i32, i32
  }
  func.func @transform_9(%arg0: i32, %arg1: memref<1xi32, #tpu.memory_space<smem>>) -> (i32, i32, i32) {
    %c0_i32 = arith.constant 0 : i32
    %c0_i32_0 = arith.constant 0 : i32
    %c0_i32_1 = arith.constant 0 : i32
    return %arg0, %c0_i32, %c0_i32_0 : i32, i32, i32
  }
  func.func @transform_10(%arg0: i32, %arg1: memref<1xi32, #tpu.memory_space<smem>>) -> (i32, i32) {
    %c0_i32 = arith.constant 0 : i32
    %c0_i32_0 = arith.constant 0 : i32
    %c0_i32_1 = arith.constant 0 : i32
    return %c0_i32, %c0_i32_0 : i32, i32
  }
  func.func @transform_11(%arg0: i32, %arg1: memref<1xi32, #tpu.memory_space<smem>>) -> (i32, i32) {
    %c0_i32 = arith.constant 0 : i32
    %c0_i32_0 = arith.constant 0 : i32
    %c0_i32_1 = arith.constant 0 : i32
    return %c0_i32, %c0_i32_0 : i32, i32
  }
}

</mosaic_0001>

<bundles_post_ra>
// kernel: tpu_custom_call.1
= control target key start
LH: loop header
LB: loop body
LE: loop exit
PB: predicated region body
PF: predicated region fallthrough
CT: control target
= control target key end

     0   :  { %19 = vsyncpa [#allocation7], 0  ;;  %s1372_s0 = inlined_call_operand.<no memory space> [shape: s32[1], index: 0, kind: input, shape index: {}]   ;;  %s1373_s1 = inlined_call_operand.vmem [shape: s32[1,8,1], index: 1, kind: input, shape index: {}]   ;;  %s1374_s2 = inlined_call_operand.hbm [shape: f32[1,8,128], index: 2, kind: input, shape index: {}]   ;;  %s1375_s3 = inlined_call_operand.vmem [shape: f32[8,128], index: 3, kind: input, shape index: {}]   ;;  %s1376_s4 = inlined_call_operand.hbm [shape: f32[8,128], index: 4, kind: input, shape index: {}]   ;;  %s1377_s5 = inlined_call_operand.hbm [shape: f32[32,128], index: 5, kind: input, shape index: {}]   ;;  %s1378_s6 = inlined_call_operand.hbm [shape: f32[256,512], index: 6, kind: input, shape index: {}]   ;;  %s1379_s7 = inlined_call_operand.vmem [shape: f32[1,512], index: 7, kind: input, shape index: {}]   ;;  %s1380_s8 = inlined_call_operand.hbm [shape: f32[9,128,128], index: 8, kind: input, shape index: {}]   ;;  %s1381_s9 = inlined_call_operand.vmem [shape: f32[9,1,128], index: 9, kind: input, shape index: {}]   ;;  %s1382_s10 = inlined_call_operand.hbm [shape: f32[1,8,128], index: 10, kind: output, shape index: {0}]   ;;  %s1383_s11 = inlined_call_operand.hbm [shape: f32[8,128], index: 11, kind: output, shape index: {1}]   ;;  %s1384_s12 = inlined_call_operand.hbm [shape: f32[8,128], index: 12, kind: output, shape index: {2}]  }
   0x1   :  { %20 = vsyncpa [#allocation10], 0 }
   0x2   :  { %21 = vsyncpa [#allocation13], 0 }
   0x3   :  { %22 = vsyncpa [#allocation8], 0 }
   0x4   :  { %23 = vsyncpa [#allocation17], 0  ;;  %s1146_s21 = smov [#allocation9]   ;;  %s1147_s23 = smov [#allocation12]  }
   0x5   :  { %s44_s22 = sshll.u32 %s1146_s21, 4  ;;  %s65_s24 = sshll.u32 %s1147_s23, 4  ;;  %s45_s22 = int_to_ptr.vmem [resolvable:$true] %s44_s22  ;;  %s1227_s24 = int_to_ptr.vmem [resolvable:$true] %s65_s24 }
   0x6   :  { %s958_s27 = scalar_lea.hbm %s1376_s4, 128 }
   0x7   :  { %p959_p0 = scmp.ne.s32.totalorder %s1376_s4, %s958_s27  ;;  %p962_p1 = scmp.lt.u32.totalorder %s958_s27, %s1376_s4 }
   0x9   :  { %p964_p2 = pnand %p962_p1, %p959_p0 }
   0xb   :  { %967 = shalt.err (!%p964_p2)
}
   0xc   :  { %s968_s14 = scalar_lea.vmem %s45_s22, 128  ;;  %p973_p4 = scmp.lt.s32.totalorder %s45_s22, %s45_s22 }
   0xd   :  { %p969_p3 = scmp.ne.s32.totalorder %s45_s22, %s968_s14  ;;  %p974_p5 = scmp.lt.s32.totalorder %s968_s14, %s968_s14 }
   0xf   :  { %p975_p6 = por %p974_p5, %p973_p4 }
  0x11   :  { %p976_p7 = pnand %p975_p6, %p969_p3 }
  0x13   :  { %979 = shalt.err (!%p976_p7)
}
  0x14   :  { %47 = dma.hbm_to_vmem [thread:$0]  %s1376_s4, 128, %s45_s22, [#allocation10]  }
  0x15   :  { %s980_s19 = scalar_lea.hbm %s1378_s6, 16384 }
  0x16   :  { %p981_p8 = scmp.ne.s32.totalorder %s1378_s6, %s980_s19  ;;  %p984_p9 = scmp.lt.u32.totalorder %s980_s19, %s1378_s6 }
  0x18   :  { %p986_p10 = pnand %p984_p9, %p981_p8 }
  0x1a   :  { %989 = shalt.err (!%p986_p10)
}
  0x1b   :  { %s990_s26 = scalar_lea.vmem %s1227_s24, 16384  ;;  %p995_p12 = scmp.lt.s32.totalorder %s1227_s24, %s1227_s24 }
  0x1c   :  { %p991_p11 = scmp.ne.s32.totalorder %s1227_s24, %s990_s26  ;;  %p996_p13 = scmp.lt.s32.totalorder %s990_s26, %s990_s26 }
  0x1e   :  { %p997_p0 = por %p996_p13, %p995_p12 }
  0x20   :  { %p998_p1 = pnand %p997_p0, %p991_p11 }
  0x22   :  { %1001 = shalt.err (!%p998_p1)
}
  0x23   :  { %s1148_s4 = smov 512   ;;  %s1149_s22 = smov 32  }
  0x24   :  { %71 = dma.hbm_to_vmem [thread:$0]  %s1378_s6, 16384, %s1227_s24, [#allocation13], %s1148_s4, %s1148_s4, %s1149_s22  }
  0x25   :  { %s1150_s29 = smov [#allocation6]   ;;  %s1151_s13 = smov [#allocation11]  }
  0x26   :  { %s32_s30 = sshll.u32 %s1150_s29, 4  ;;  %s53_s14 = sshll.u32 %s1151_s13, 4  ;;  %s33_s30 = int_to_ptr.vmem [resolvable:$true] %s32_s30  ;;  %s1258_s14 = int_to_ptr.vmem [resolvable:$true] %s53_s14 }
  0x27   :  { %s1002_s17 = scalar_lea.hbm %s1374_s2, 128 }
  0x28   :  { %p1003_p2 = scmp.ne.s32.totalorder %s1374_s2, %s1002_s17  ;;  %p1006_p3 = scmp.lt.u32.totalorder %s1002_s17, %s1374_s2 }
  0x2a   :  { %p1008_p4 = pnand %p1006_p3, %p1003_p2 }
  0x2c   :  { %1011 = shalt.err (!%p1008_p4)
}
  0x2d   :  { %s1012_s6 = scalar_lea.vmem %s33_s30, 128  ;;  %p1017_p6 = scmp.lt.s32.totalorder %s33_s30, %s33_s30 }
  0x2e   :  { %p1013_p5 = scmp.ne.s32.totalorder %s33_s30, %s1012_s6  ;;  %p1018_p7 = scmp.lt.s32.totalorder %s1012_s6, %s1012_s6 }
  0x30   :  { %p1019_p8 = por %p1018_p7, %p1017_p6 }
  0x32   :  { %p1020_p9 = pnand %p1019_p8, %p1013_p5 }
  0x34   :  { %1023 = shalt.err (!%p1020_p9)
}
  0x35   :  { %35 = dma.hbm_to_vmem [thread:$0]  %s1374_s2, 128, %s33_s30, [#allocation7]  }
  0x36   :  { %s1024_s4 = scalar_lea.hbm %s1377_s5, 512 }
  0x37   :  { %p1025_p10 = scmp.ne.s32.totalorder %s1377_s5, %s1024_s4  ;;  %p1028_p11 = scmp.lt.u32.totalorder %s1024_s4, %s1377_s5 }
  0x39   :  { %p1030_p12 = pnand %p1028_p11, %p1025_p10 }
  0x3b   :  { %1033 = shalt.err (!%p1030_p12)
}
  0x3c   :  { %s1034_s13 = scalar_lea.vmem %s1258_s14, 512  ;;  %p1039_p0 = scmp.lt.s32.totalorder %s1258_s14, %s1258_s14 }
  0x3d   :  { %p1035_p13 = scmp.ne.s32.totalorder %s1258_s14, %s1034_s13  ;;  %p1040_p1 = scmp.lt.s32.totalorder %s1034_s13, %s1034_s13 }
  0x3f   :  { %p1041_p2 = por %p1040_p1, %p1039_p0 }
  0x41   :  { %p1042_p3 = pnand %p1041_p2, %p1035_p13 }
  0x43   :  { %1045 = shalt.err (!%p1042_p3)
}
  0x44   :  { %s1152_s2 = smov 128   ;;  %s1153_s30 = smov 8  }
  0x45   :  { %59 = dma.hbm_to_vmem [thread:$0]  %s1377_s5, 512, %s1258_s14, [#allocation10], %s1152_s2, %s1152_s2, %s1153_s30  }
  0x46   :  { %s696_s19 = sshll.u32 %s1372_s0, 11  ;;  %s1154_s24 = smov [#allocation14]  }
  0x47   :  { %s82_s6 = scalar_lea.hbm %s1380_s8, %s696_s19  ;;  %s83_s23 = sshll.u32 %s1154_s24, 4  ;;  %s84_s23 = int_to_ptr.vmem [resolvable:$true] %s83_s23 }
  0x48   :  { %s1046_s25 = scalar_lea.hbm %s82_s6, 2048  ;;  %s1048_s22 = scalar_lea.hbm %s1380_s8, 18432 }
  0x49   :  { %p1047_p4 = scmp.ne.s32.totalorder %s82_s6, %s1046_s25  ;;  %p1049_p5 = scmp.lt.u32.totalorder %s82_s6, %s1380_s8 }
  0x4a   :  { %p1050_p6 = scmp.lt.u32.totalorder %s1048_s22, %s1046_s25  ;;  %p1052_p8 = scmp.lt.u32.totalorder %s1046_s25, %s82_s6 }
  0x4c   :  { %p1051_p7 = por %p1050_p6, %p1049_p5 }
  0x4e   :  { %p1053_p9 = por %p1052_p8, %p1051_p7 }
  0x50   :  { %p1054_p10 = pnand %p1053_p9, %p1047_p4 }
  0x52   :  { %1057 = shalt.err (!%p1054_p10)
}
  0x53   :  { %s1058_s5 = scalar_lea.vmem %s84_s23, 2048  ;;  %p1063_p12 = scmp.lt.s32.totalorder %s84_s23, %s84_s23 }
  0x54   :  { %p1059_p11 = scmp.ne.s32.totalorder %s84_s23, %s1058_s5  ;;  %p1064_p13 = scmp.lt.s32.totalorder %s1058_s5, %s1058_s5 }
  0x56   :  { %p1065_p0 = por %p1064_p13, %p1063_p12 }
  0x58   :  { %p1066_p1 = pnand %p1065_p0, %p1059_p11 }
  0x5a   :  { %1069 = shalt.err (!%p1066_p1)
}
  0x5b   :  { %89 = dma.hbm_to_vmem [thread:$0]  %s82_s6, 2048, %s84_s23, [#allocation13], %s1152_s2, %s1152_s2, %s1153_s30  }
  0x5c   :  { %1136 = dma.done.wait [#allocation7], 128  }
  0x5d   :  { %1137 = vsyncadd [#allocation7], 4294967168 }
  0x5e   :  { %1138 = dma.done.wait [#allocation10], 640  }
  0x5f   :  { %1139 = vsyncadd [#allocation10], 4294966656 }
  0x60   :  { %1140 = dma.done.wait [#allocation13], 18432  }
  0x61   :  { %1141 = vsyncadd [#allocation13], 4294948864  ;;  %v1155_v0 = vmov 0   ;;  %v1156_v1 = vmov 0.0|0.0   ;;  %v130_v2 = vld [vmem:[%s1373_s1] sm:$0xff]  ;;  %v139_v3 = vld [vmem:[#allocation11] sm:$0xff] }
  0x62   :  { %939 = vset.pattern.permute.xlu0 %v1155_v0  ;;  %765 = vmatprep.subr.bf16.mxu0 %v1156_v1  ;;  %v140_v4 = vld [vmem:[#allocation11 + $0x8] sm:$0xff]  ;;  %v141_v6 = vld [vmem:[#allocation11 + $0x10] sm:$0xff]  ;;  %v142_v7 = vld [vmem:[#allocation11 + $0x18] sm:$0xff]  ;;  %vm1157_vm0 = vmmov 0   ;;  %v1158_v8 = vmov 0.0   ;;  %vm144_vm1 = vcmask 261120  }
  0x63   :  { %134 = vperm.xlu0 %939, %v130_v2   ;;  %v766_v5 = vpack.c.bf16 %v140_v4, %v139_v3  ;;  %727 = vmatprep.mubr.msk.f32.mxu0 %vm1157_vm0, %v1158_v8  ;;  %v769_v9 = vpack.c.bf16 %v142_v7, %v141_v6  ;;  %v221_v10 = vld [vmem:[#allocation12 + $0x8] sm:$0xff]  ;;  %v223_v12 = vld [vmem:[#allocation12 + $0x18] sm:$0xff]  ;;  %v220_v15 = vld [vmem:[#allocation12] sm:$0xff] }
  0x64   :  { %v225_v11 = vld [vmem:[#allocation12 + $0x28] sm:$0xff]  ;;  %v227_v14 = vld [vmem:[#allocation12 + $0x38] sm:$0xff]  ;;  %v224_v16 = vld [vmem:[#allocation12 + $0x20] sm:$0xff] }
  0x65   :  { %767 = vmatpush3.bf16.msra.mxu0 %v766_v5  ;;  %v771_v13 = vpack.c.bf16 %v225_v11, %v221_v10  ;;  %v835_v17 = vpack.c.bf16 %v227_v14, %v223_v12  ;;  %v773_v18 = vpack.c.bf16 %v224_v16, %v220_v15  ;;  %v229_v19 = vld [vmem:[#allocation12 + $0x48] sm:$0xff]  ;;  %v228_v22 = vld [vmem:[#allocation12 + $0x40] sm:$0xff] }
  0x66   :  { %768 = vmatprep.subr.bf16.mxu0 %v1156_v1  ;;  %v233_v20 = vld [vmem:[#allocation12 + $0x68] sm:$0xff]  ;;  %v232_v23 = vld [vmem:[#allocation12 + $0x60] sm:$0xff] }
  0x67   :  { %772 = vmatprep.subr.bf16.mxu1 %v771_v13  ;;  %v775_v21 = vpack.c.bf16 %v233_v20, %v229_v19  ;;  %v777_v24 = vpack.c.bf16 %v232_v23, %v228_v22  ;;  %v237_v25 = vld [vmem:[#allocation12 + $0x88] sm:$0xff]  ;;  %v236_v28 = vld [vmem:[#allocation12 + $0x80] sm:$0xff] }
  0x68   :  { %774 = vmatpush1.bf16.msra.mxu1 %v773_v18  ;;  %v241_v26 = vld [vmem:[#allocation12 + $0xa8] sm:$0xff]  ;;  %v240_v29 = vld [vmem:[#allocation12 + $0xa0] sm:$0xff] }
  0x69   :  { %770 = vmatpush3.bf16.msra.mxu0 %v769_v9  ;;  %776 = vmatprep.subr.bf16.mxu1 %v775_v21  ;;  %v779_v27 = vpack.c.bf16 %v241_v26, %v237_v25  ;;  %v781_v30 = vpack.c.bf16 %v240_v29, %v236_v28  ;;  %v245_v31 = vld [vmem:[#allocation12 + $0xc8] sm:$0xff]  ;;  %v244_v34 = vld [vmem:[#allocation12 + $0xc0] sm:$0xff] }
  0x6a   :  { %836 = vmatprep.subr.bf16.mxu0 %v835_v17  ;;  %v249_v32 = vld [vmem:[#allocation12 + $0xe8] sm:$0xff]  ;;  %v248_v35 = vld [vmem:[#allocation12 + $0xe0] sm:$0xff] }
  0x6b   :  { %v783_v33 = vpack.c.bf16 %v249_v32, %v245_v31  ;;  %v785_v36 = vpack.c.bf16 %v248_v35, %v244_v34  ;;  %v253_v37 = vld [vmem:[#allocation12 + $0x108] sm:$0xff]  ;;  %v252_v40 = vld [vmem:[#allocation12 + $0x100] sm:$0xff] }
  0x6c   :  { %778 = vmatpush1.bf16.msra.mxu1 %v777_v24  ;;  %v257_v38 = vld [vmem:[#allocation12 + $0x128] sm:$0xff]  ;;  %v256_v41 = vld [vmem:[#allocation12 + $0x120] sm:$0xff] }
  0x6d   :  { %780 = vmatprep.subr.bf16.mxu1 %v779_v27  ;;  %v787_v39 = vpack.c.bf16 %v257_v38, %v253_v37  ;;  %v789_v42 = vpack.c.bf16 %v256_v41, %v252_v40  ;;  %v261_v43 = vld [vmem:[#allocation12 + $0x148] sm:$0xff]  ;;  %v260_v46 = vld [vmem:[#allocation12 + $0x140] sm:$0xff] }
  0x6e   :  { %v265_v44 = vld [vmem:[#allocation12 + $0x168] sm:$0xff]  ;;  %v264_v47 = vld [vmem:[#allocation12 + $0x160] sm:$0xff] }
  0x6f   :  { %v791_v45 = vpack.c.bf16 %v265_v44, %v261_v43  ;;  %v793_v48 = vpack.c.bf16 %v264_v47, %v260_v46  ;;  %v269_v49 = vld [vmem:[#allocation12 + $0x188] sm:$0xff]  ;;  %v268_v52 = vld [vmem:[#allocation12 + $0x180] sm:$0xff]  ;;  %v131_v44 = vlaneseq  ;;  %v222_v46 = vld [vmem:[#allocation12 + $0x10] sm:$0xff] }
  0x70   :  { %782 = vmatpush1.bf16.msra.mxu1 %v781_v30  ;;  %v273_v50 = vld [vmem:[#allocation12 + $0x1a8] sm:$0xff]  ;;  %v272_v53 = vld [vmem:[#allocation12 + $0x1a0] sm:$0xff]  ;;  %v226_v47 = vld [vmem:[#allocation12 + $0x30] sm:$0xff] }
  0x71   :  { %784 = vmatprep.subr.bf16.mxu1 %v783_v33  ;;  %v795_v51 = vpack.c.bf16 %v273_v50, %v269_v49  ;;  %v797_v54 = vpack.c.bf16 %v272_v53, %v268_v52  ;;  %v277_v55 = vld [vmem:[#allocation12 + $0x1c8] sm:$0xff]  ;;  %v276_v58 = vld [vmem:[#allocation12 + $0x1c0] sm:$0xff]  ;;  %v235_v49 = vld [vmem:[#allocation12 + $0x78] sm:$0xff] }
  0x72   :  { %v281_v56 = vld [vmem:[#allocation12 + $0x1e8] sm:$0xff]  ;;  %v280_v59 = vld [vmem:[#allocation12 + $0x1e0] sm:$0xff]  ;;  %v230_v53 = vld [vmem:[#allocation12 + $0x50] sm:$0xff] }
  0x73   :  { %v799_v57 = vpack.c.bf16 %v281_v56, %v277_v55  ;;  %v801_v60 = vpack.c.bf16 %v280_v59, %v276_v58  ;;  %v285_v61 = vld [vmem:[#allocation12 + $0x208] sm:$0xff]  ;;  %v284_v0 = vld [vmem:[#allocation12 + $0x200] sm:$0xff]  ;;  %v239_v56 = vld [vmem:[#allocation12 + $0x98] sm:$0xff] }
  0x74   :  { %786 = vmatpush1.bf16.msra.mxu1 %v785_v36  ;;  %v289_v62 = vld [vmem:[#allocation12 + $0x228] sm:$0xff]  ;;  %v288_v2 = vld [vmem:[#allocation12 + $0x220] sm:$0xff] }
  0x75   :  { %788 = vmatprep.subr.bf16.mxu1 %v787_v39  ;;  %v803_v63 = vpack.c.bf16 %v289_v62, %v285_v61  ;;  %v805_v3 = vpack.c.bf16 %v288_v2, %v284_v0  ;;  %v293_v4 = vld [vmem:[#allocation12 + $0x248] sm:$0xff]  ;;  %v292_v7 = vld [vmem:[#allocation12 + $0x240] sm:$0xff]  ;;  %v242_v61 = vld [vmem:[#allocation12 + $0xb0] sm:$0xff] }
  0x76   :  { %v297_v5 = vld [vmem:[#allocation12 + $0x268] sm:$0xff]  ;;  %v296_v9 = vld [vmem:[#allocation12 + $0x260] sm:$0xff]  ;;  %v247_v62 = vld [vmem:[#allocation12 + $0xd8] sm:$0xff] }
  0x77   :  { %v807_v6 = vpack.c.bf16 %v297_v5, %v293_v4  ;;  %v809_v10 = vpack.c.bf16 %v296_v9, %v292_v7  ;;  %v301_v11 = vld [vmem:[#allocation12 + $0x288] sm:$0xff]  ;;  %v300_v14 = vld [vmem:[#allocation12 + $0x280] sm:$0xff]  ;;  %v250_v4 = vld [vmem:[#allocation12 + $0xf0] sm:$0xff] }
  0x78   :  { %790 = vmatpush1.bf16.msra.mxu1 %v789_v42  ;;  %v305_v12 = vld [vmem:[#allocation12 + $0x2a8] sm:$0xff]  ;;  %v304_v15 = vld [vmem:[#allocation12 + $0x2a0] sm:$0xff]  ;;  %v255_v5 = vld [vmem:[#allocation12 + $0x118] sm:$0xff] }
  0x79   :  { %792 = vmatprep.subr.bf16.mxu1 %v791_v45  ;;  %v811_v13 = vpack.c.bf16 %v305_v12, %v301_v11  ;;  %v813_v16 = vpack.c.bf16 %v304_v15, %v300_v14  ;;  %v309_v17 = vld [vmem:[#allocation12 + $0x2c8] sm:$0xff]  ;;  %v308_v20 = vld [vmem:[#allocation12 + $0x2c0] sm:$0xff]  ;;  %v132_v45 = vand.u32 127, %v131_v44  ;;  %v258_v11 = vld [vmem:[#allocation12 + $0x130] sm:$0xff] }
  0x7a   :  { %v313_v18 = vld [vmem:[#allocation12 + $0x2e8] sm:$0xff]  ;;  %v312_v21 = vld [vmem:[#allocation12 + $0x2e0] sm:$0xff]  ;;  %v263_v12 = vld [vmem:[#allocation12 + $0x158] sm:$0xff] }
  0x7b   :  { %v815_v19 = vpack.c.bf16 %v313_v18, %v309_v17  ;;  %v817_v22 = vpack.c.bf16 %v312_v21, %v308_v20  ;;  %v317_v23 = vld [vmem:[#allocation12 + $0x308] sm:$0xff]  ;;  %v316_v26 = vld [vmem:[#allocation12 + $0x300] sm:$0xff]  ;;  %v266_v17 = vld [vmem:[#allocation12 + $0x170] sm:$0xff] }
  0x7c   :  { %794 = vmatpush1.bf16.msra.mxu1 %v793_v48  ;;  %v321_v24 = vld [vmem:[#allocation12 + $0x328] sm:$0xff]  ;;  %v320_v27 = vld [vmem:[#allocation12 + $0x320] sm:$0xff]  ;;  %v231_v48 = vld [vmem:[#allocation12 + $0x58] sm:$0xff] }
  0x7d   :  { %796 = vmatprep.subr.bf16.mxu1 %v795_v51  ;;  %v819_v25 = vpack.c.bf16 %v321_v24, %v317_v23  ;;  %v821_v28 = vpack.c.bf16 %v320_v27, %v316_v26  ;;  %v325_v29 = vld [vmem:[#allocation12 + $0x348] sm:$0xff]  ;;  %v324_v32 = vld [vmem:[#allocation12 + $0x340] sm:$0xff]  ;;  %v837_v51 = vpack.c.bf16 %v226_v47, %v222_v46  ;;  %v839_v52 = vpack.c.bf16 %v235_v49, %v231_v48  ;;  %v271_v18 = vld [vmem:[#allocation12 + $0x198] sm:$0xff] }
  0x7e   :  { %v329_v30 = vld [vmem:[#allocation12 + $0x368] sm:$0xff]  ;;  %v328_v33 = vld [vmem:[#allocation12 + $0x360] sm:$0xff]  ;;  %v274_v23 = vld [vmem:[#allocation12 + $0x1b0] sm:$0xff] }
  0x7f   :  { %v823_v31 = vpack.c.bf16 %v329_v30, %v325_v29  ;;  %v825_v34 = vpack.c.bf16 %v328_v33, %v324_v32  ;;  %v333_v35 = vld [vmem:[#allocation12 + $0x388] sm:$0xff]  ;;  %v332_v38 = vld [vmem:[#allocation12 + $0x380] sm:$0xff]  ;;  %v279_v24 = vld [vmem:[#allocation12 + $0x1d8] sm:$0xff] }
  0x80   :  { %798 = vmatpush1.bf16.msra.mxu1 %v797_v54  ;;  %v337_v36 = vld [vmem:[#allocation12 + $0x3a8] sm:$0xff]  ;;  %v336_v39 = vld [vmem:[#allocation12 + $0x3a0] sm:$0xff]  ;;  %v234_v54 = vld [vmem:[#allocation12 + $0x70] sm:$0xff] }
  0x81   :  { %800 = vmatprep.subr.bf16.mxu1 %v799_v57  ;;  %v827_v37 = vpack.c.bf16 %v337_v36, %v333_v35  ;;  %v829_v40 = vpack.c.bf16 %v336_v39, %v332_v38  ;;  %v341_v41 = vld [vmem:[#allocation12 + $0x3c8] sm:$0xff]  ;;  %v243_v57 = vld [vmem:[#allocation12 + $0xb8] sm:$0xff]  ;;  %v841_v58 = vpack.c.bf16 %v234_v54, %v230_v53  ;;  %v282_v29 = vld [vmem:[#allocation12 + $0x1f0] sm:$0xff] }
  0x82   :  { %v345_v42 = vld [vmem:[#allocation12 + $0x3e8] sm:$0xff]  ;;  %v843_v59 = vpack.c.bf16 %v243_v57, %v239_v56  ;;  %v287_v30 = vld [vmem:[#allocation12 + $0x218] sm:$0xff]  ;;  %v290_v35 = vld [vmem:[#allocation12 + $0x230] sm:$0xff] }
  0x83   :  { %v831_v43 = vpack.c.bf16 %v345_v42, %v341_v41  ;;  %v295_v36 = vld [vmem:[#allocation12 + $0x258] sm:$0xff]  ;;  %v298_v41 = vld [vmem:[#allocation12 + $0x270] sm:$0xff] }
  0x84   :  { %802 = vmatpush1.bf16.msra.mxu1 %v801_v60  ;;  %v238_v60 = vld [vmem:[#allocation12 + $0x90] sm:$0xff]  ;;  %v303_v42 = vld [vmem:[#allocation12 + $0x298] sm:$0xff] }
  0x85   :  { %804 = vmatprep.subr.bf16.mxu1 %v803_v63  ;;  %v251_v63 = vld [vmem:[#allocation12 + $0xf8] sm:$0xff]  ;;  %v845_v0 = vpack.c.bf16 %v242_v61, %v238_v60  ;;  %v302_v47 = vld [vmem:[#allocation12 + $0x290] sm:$0xff] }
  0x86   :  { %v847_v2 = vpack.c.bf16 %v251_v63, %v247_v62  ;;  %v306_v48 = vld [vmem:[#allocation12 + $0x2b0] sm:$0xff]  ;;  %v311_v49 = vld [vmem:[#allocation12 + $0x2d8] sm:$0xff] }
  0x87   :  { %v310_v53 = vld [vmem:[#allocation12 + $0x2d0] sm:$0xff]  ;;  %v323_v56 = vld [vmem:[#allocation12 + $0x338] sm:$0xff] }
  0x88   :  { %806 = vmatpush1.bf16.msra.mxu1 %v805_v3  ;;  %v246_v3 = vld [vmem:[#allocation12 + $0xd0] sm:$0xff]  ;;  %v327_v61 = vld [vmem:[#allocation12 + $0x358] sm:$0xff] }
  0x89   :  { %808 = vmatprep.subr.bf16.mxu1 %v807_v6  ;;  %v259_v6 = vld [vmem:[#allocation12 + $0x138] sm:$0xff]  ;;  %v849_v7 = vpack.c.bf16 %v250_v4, %v246_v3  ;;  %v314_v54 = vld [vmem:[#allocation12 + $0x2f0] sm:$0xff] }
  0x8a   :  { %v851_v9 = vpack.c.bf16 %v259_v6, %v255_v5  ;;  %v881_v57 = vpack.c.bf16 %v314_v54, %v310_v53  ;;  %v322_v60 = vld [vmem:[#allocation12 + $0x330] sm:$0xff]  ;;  %v331_v62 = vld [vmem:[#allocation12 + $0x378] sm:$0xff] }
  0x8b   :  { %v330_v3 = vld [vmem:[#allocation12 + $0x370] sm:$0xff]  ;;  %v335_v4 = vld [vmem:[#allocation12 + $0x398] sm:$0xff] }
  0x8c   :  { %810 = vmatpush1.bf16.msra.mxu1 %v809_v10  ;;  %v254_v10 = vld [vmem:[#allocation12 + $0x110] sm:$0xff]  ;;  %v339_v5 = vld [vmem:[#allocation12 + $0x3b8] sm:$0xff] }
  0x8d   :  { %812 = vmatprep.subr.bf16.mxu1 %v811_v13  ;;  %v267_v13 = vld [vmem:[#allocation12 + $0x178] sm:$0xff]  ;;  %v853_v14 = vpack.c.bf16 %v258_v11, %v254_v10  ;;  %v338_v10 = vld [vmem:[#allocation12 + $0x3b0] sm:$0xff] }
  0x8e   :  { %v855_v15 = vpack.c.bf16 %v267_v13, %v263_v12  ;;  %v343_v11 = vld [vmem:[#allocation12 + $0x3d8] sm:$0xff]  ;;  %v348_v53 = vld [vmem:[%s1379_s7] sm:$0xf]  ;;  %s1159_s7 = smov [#allocation16]  }
  0x8f   :  { %v347_v12 = vld [vmem:[#allocation12 + $0x3f8] sm:$0xff]  ;;  %s655_s2 = sshll.u32 %s1159_s7, 4  ;;  %s656_s2 = int_to_ptr.vmem [resolvable:$true] %s655_s2 }
  0x90   :  { %814 = vmatpush1.bf16.msra.mxu1 %v813_v16  ;;  %v262_v16 = vld [vmem:[#allocation12 + $0x150] sm:$0xff]  ;;  %s1070_s30 = scalar_lea.vmem %s656_s2, 128  ;;  %p1075_p3 = scmp.lt.s32.totalorder %s656_s2, %s656_s2 }
  0x91   :  { %816 = vmatprep.subr.bf16.mxu1 %v815_v19  ;;  %v275_v19 = vld [vmem:[#allocation12 + $0x1b8] sm:$0xff]  ;;  %v857_v20 = vpack.c.bf16 %v266_v17, %v262_v16  ;;  %v344_v16 = vld [vmem:[#allocation12 + $0x3e0] sm:$0xff]  ;;  %v342_v17 = vld [vmem:[#allocation12 + $0x3d0] sm:$0xff]  ;;  %p1071_p2 = scmp.ne.s32.totalorder %s656_s2, %s1070_s30  ;;  %p1076_p4 = scmp.lt.s32.totalorder %s1070_s30, %s1070_s30 }
  0x92   :  { %v859_v21 = vpack.c.bf16 %v275_v19, %v271_v18  ;;  %v346_v19 = vld [vmem:[#allocation12 + $0x3f0] sm:$0xff] }
  0x93   :  { %p1077_p5 = por %p1076_p4, %p1075_p3 }
  0x94   :  { %818 = vmatpush1.bf16.msra.mxu1 %v817_v22  ;;  %v270_v22 = vld [vmem:[#allocation12 + $0x190] sm:$0xff] }
  0x95   :  { %820 = vmatprep.subr.bf16.mxu1 %v819_v25  ;;  %v283_v25 = vld [vmem:[#allocation12 + $0x1f8] sm:$0xff]  ;;  %v861_v26 = vpack.c.bf16 %v274_v23, %v270_v22  ;;  %v143_v22 = vld [vmem:[#allocation6] sm:$0xff]  ;;  %p1078_p6 = pnand %p1077_p5, %p1071_p2 }
  0x96   :  { %v863_v27 = vpack.c.bf16 %v283_v25, %v279_v24 }
  0x98   :  { %822 = vmatpush1.bf16.msra.mxu1 %v821_v28  ;;  %v278_v28 = vld [vmem:[#allocation12 + $0x1d0] sm:$0xff] }
  0x99   :  { %824 = vmatprep.subr.bf16.mxu1 %v823_v31  ;;  %v291_v31 = vld [vmem:[#allocation12 + $0x238] sm:$0xff]  ;;  %v865_v32 = vpack.c.bf16 %v282_v29, %v278_v28  ;;  %v538_v29 = vld [vmem:[#allocation14 + $0x10] sm:$0xff] }
  0x9a   :  { %v867_v33 = vpack.c.bf16 %v291_v31, %v287_v30  ;;  %v539_v30 = vld [vmem:[#allocation14 + $0x18] sm:$0xff] }
  0x9b   :  { %v903_v31 = vpack.c.bf16 %v539_v30, %v538_v29 }
  0x9c   :  { %826 = vmatpush1.bf16.msra.mxu1 %v825_v34  ;;  %v286_v34 = vld [vmem:[#allocation12 + $0x210] sm:$0xff] }
  0x9d   :  { %828 = vmatprep.subr.bf16.mxu1 %v827_v37  ;;  %v299_v37 = vld [vmem:[#allocation12 + $0x278] sm:$0xff]  ;;  %v869_v38 = vpack.c.bf16 %v290_v35, %v286_v34  ;;  %v542_v35 = vld [vmem:[#allocation14 + $0x30] sm:$0xff] }
  0x9e   :  { %v871_v39 = vpack.c.bf16 %v299_v37, %v295_v36  ;;  %v544_v37 = vld [vmem:[#allocation14 + $0x40] sm:$0xff] }
  0xa0   :  { %830 = vmatpush1.bf16.msra.mxu1 %v829_v40  ;;  %v294_v40 = vld [vmem:[#allocation12 + $0x250] sm:$0xff] }
  0xa1   :  { %832 = vmatprep.subr.bf16.mxu1 %v831_v43  ;;  %v307_v43 = vld [vmem:[#allocation12 + $0x2b8] sm:$0xff] }
  0xa2   :  { %v875_v46 = vpack.c.bf16 %v307_v43, %v303_v42  ;;  %v548_v42 = vld [vmem:[#allocation14 + $0x60] sm:$0xff] }
  0xe2   :  { %v135_v50 = vpop.permute.xlu0 %134 }
  0xe3   :  { %vm136_vm2 = vcmp.eq.s32.totalorder %v132_v45, %v135_v50  ;;  %v873_v45 = vpack.c.bf16 %v298_v41, %v294_v40  ;;  %v315_v50 = vld [vmem:[#allocation12 + $0x2f8] sm:$0xff]  ;;  %v546_v40 = vld [vmem:[#allocation14 + $0x50] sm:$0xff] }
  0xe4   :  { %v690_v55 = vsel %vm136_vm2, 1.0, %v1158_v8  ;;  %v547_v41 = vld [vmem:[#allocation14 + $0x58] sm:$0xff] }
  0xe5   :  { %728 = vmatmul.mubr.msk.f32.vlgmr.msra.gmra.mrb[0].mxu0 %vm144_vm1, %v690_v55  ;;  %v319_v55 = vld [vmem:[#allocation12 + $0x318] sm:$0xff]  ;;  %v915_v43 = vpack.c.bf16 %v547_v41, %v546_v40 }
  0xe6   :  { %838 = vmatpush1.bf16.msra.mxu0 %v837_v51  ;;  %v877_v51 = vpack.c.bf16 %v306_v48, %v302_v47  ;;  %v550_v47 = vld [vmem:[#allocation14 + $0x70] sm:$0xff]  ;;  %v551_v48 = vld [vmem:[#allocation14 + $0x78] sm:$0xff] }
  0xe7   :  { %840 = vmatprep.subr.bf16.mxu0 %v839_v52  ;;  %v879_v52 = vpack.c.bf16 %v315_v50, %v311_v49  ;;  %v921_v49 = vpack.c.bf16 %v551_v48, %v550_v47  ;;  %v351_v50 = vshrl.u32 %v131_v44, 7 }
  0xe9   :  { %v356_v54 = vsub.s32 1, %v351_v50 }
  0xea   :  { %842 = vmatpush1.bf16.msra.mxu0 %v841_v58  ;;  %v883_v58 = vpack.c.bf16 %v323_v56, %v319_v55  ;;  %v364_v55 = vsub.s32 3, %v351_v50 }
  0xeb   :  { %844 = vmatprep.subr.bf16.mxu0 %v843_v59  ;;  %v318_v59 = vld [vmem:[#allocation12 + $0x310] sm:$0xff] }
  0xec   :  { %v885_v63 = vpack.c.bf16 %v322_v60, %v318_v59  ;;  %v365_v59 = vrot.slane %v348_v53, %v364_v55 }
  0xee   :  { %846 = vmatpush1.bf16.msra.mxu0 %v845_v0  ;;  %v887_v0 = vpack.c.bf16 %v331_v62, %v327_v61 }
  0xef   :  { %848 = vmatprep.subr.bf16.mxu0 %v847_v2  ;;  %v326_v2 = vld [vmem:[#allocation12 + $0x350] sm:$0xff] }
  0xf0   :  { %v889_v6 = vpack.c.bf16 %v330_v3, %v326_v2 }
  0xf2   :  { %850 = vmatpush1.bf16.msra.mxu0 %v849_v7  ;;  %v891_v7 = vpack.c.bf16 %v339_v5, %v335_v4 }
  0xf3   :  { %852 = vmatprep.subr.bf16.mxu0 %v851_v9  ;;  %v334_v9 = vld [vmem:[#allocation12 + $0x390] sm:$0xff] }
  0xf4   :  { %v893_v13 = vpack.c.bf16 %v338_v10, %v334_v9 }
  0xf6   :  { %854 = vmatpush1.bf16.msra.mxu0 %v853_v14  ;;  %v895_v14 = vpack.c.bf16 %v347_v12, %v343_v11 }
  0xf7   :  { %856 = vmatprep.subr.bf16.mxu0 %v855_v15  ;;  %v340_v15 = vld [vmem:[#allocation12 + $0x3c0] sm:$0xff] }
  0xf8   :  { %v833_v18 = vpack.c.bf16 %v344_v16, %v340_v15 }
  0xfa   :  { %858 = vmatpush1.bf16.msra.mxu0 %v857_v20  ;;  %v897_v20 = vpack.c.bf16 %v346_v19, %v342_v17  ;;  %834 = vmatpush1.bf16.msra.mxu1 %v833_v18 }
  0xfb   :  { %860 = vmatprep.subr.bf16.mxu0 %v859_v21  ;;  %v126_v21 = vld [vmem:[%s1375_s3] sm:$0xff]  ;;  %899 = vmatprep.subr.bf16.mxu1 %v1156_v1 }
  0xfc   :  { %434 = vmatprep.mubr.f32.mxu1 %v126_v21  ;;  %505 = vmatprep.mubr.f32.mxu0 %v126_v21 }
  0xfe   :  { %862 = vmatpush1.bf16.msra.mxu0 %v861_v26  ;;  %v536_v26 = vld [vmem:[#allocation14] sm:$0xff] }
  0xff   :  { %864 = vmatprep.subr.bf16.mxu0 %v863_v27  ;;  %v537_v27 = vld [vmem:[#allocation14 + $0x8] sm:$0xff] }
 0x100   :  { %v900_v28 = vpack.c.bf16 %v537_v27, %v536_v26 }
 0x102   :  { %866 = vmatpush1.bf16.msra.mxu0 %v865_v32  ;;  %v540_v32 = vld [vmem:[#allocation14 + $0x20] sm:$0xff] }
 0x103   :  { %868 = vmatprep.subr.bf16.mxu0 %v867_v33  ;;  %v541_v33 = vld [vmem:[#allocation14 + $0x28] sm:$0xff] }
 0x104   :  { %v906_v34 = vpack.c.bf16 %v541_v33, %v540_v32 }
 0x106   :  { %870 = vmatpush1.bf16.msra.mxu0 %v869_v38  ;;  %v545_v38 = vld [vmem:[#allocation14 + $0x48] sm:$0xff] }
 0x107   :  { %872 = vmatprep.subr.bf16.mxu0 %v871_v39  ;;  %v912_v39 = vpack.c.bf16 %v545_v38, %v544_v37 }
 0x10a   :  { %874 = vmatpush1.bf16.msra.mxu0 %v873_v45  ;;  %v549_v45 = vld [vmem:[#allocation14 + $0x68] sm:$0xff] }
 0x10b   :  { %876 = vmatprep.subr.bf16.mxu0 %v875_v46  ;;  %v918_v46 = vpack.c.bf16 %v549_v45, %v548_v42 }
 0x10e   :  { %878 = vmatpush1.bf16.msra.mxu0 %v877_v51  ;;  %v352_v51 = vsub.s32 0, %v351_v50 }
 0x10f   :  { %880 = vmatprep.subr.bf16.mxu0 %v879_v52  ;;  %v360_v52 = vsub.s32 2, %v351_v50 }
 0x110   :  { %v353_v56 = vrot.slane %v348_v53, %v352_v51 }
 0x112   :  { %882 = vmatpush1.bf16.msra.mxu0 %v881_v57  ;;  %v361_v57 = vrot.slane %v348_v53, %v360_v52 }
 0x113   :  { %884 = vmatprep.subr.bf16.mxu0 %v883_v58  ;;  %v357_v58 = vrot.slane %v348_v53, %v356_v54 }
 0x116   :  { %886 = vmatpush1.bf16.msra.mxu0 %v885_v63 }
 0x117   :  { %888 = vmatprep.subr.bf16.mxu0 %v887_v0 }
 0x11a   :  { %890 = vmatpush1.bf16.msra.mxu0 %v889_v6 }
 0x11b   :  { %892 = vmatprep.subr.bf16.mxu0 %v891_v7 }
 0x11e   :  { %894 = vmatpush1.bf16.msra.mxu0 %v893_v13  ;;  %v128_v13 = vld [vmem:[#allocation9] sm:$0xff] }
 0x11f   :  { %896 = vmatprep.subr.bf16.mxu0 %v895_v14 }
 0x122   :  { %898 = vmatpush1.bf16.msra.mxu0 %v897_v20 }
 0x1b8   :  { %v214_v23 = vpop.f32.mrb[0].mxu0 }
 0x1b9   :  { %v215_v24 = vadd.f32 %v214_v23, %v143_v22  ;;  %v729_v25 = vpop.f32.mrb[1].mxu0 }
 0x1bb   :  { %435 = vmatmul.mubr.f32.vlgmr.msra.gmra.mrb[0].mxu1 %v215_v24  ;;  %506 = vmatmul.mubr.f32.vlgmr.msra.gmra.mrb[2].mxu0 %v215_v24 }
 0x1bc   :  { %762 = vmatprep.mubr.msk.f32.mxu1 %vm1157_vm0, %v1158_v8  ;;  %901 = vmatpush3.bf16.msra.mxu1 %v900_v28  ;;  %v543_v8 = vld [vmem:[#allocation14 + $0x38] sm:$0xff] }
 0x1bd   :  { %902 = vmatprep.subr.bf16.mxu1 %v1156_v1  ;;  %v909_v36 = vpack.c.bf16 %v543_v8, %v542_v35 }
 0x1c0   :  { %904 = vmatpush3.bf16.msra.mxu1 %v903_v31 }
 0x1c1   :  { %905 = vmatprep.subr.bf16.mxu1 %v1156_v1 }
 0x1c4   :  { %907 = vmatpush3.bf16.msra.mxu1 %v906_v34 }
 0x1c5   :  { %908 = vmatprep.subr.bf16.mxu1 %v1156_v1 }
 0x1c8   :  { %910 = vmatpush3.bf16.msra.mxu1 %v909_v36 }
 0x1c9   :  { %911 = vmatprep.subr.bf16.mxu1 %v1156_v1 }
 0x1cc   :  { %913 = vmatpush3.bf16.msra.mxu1 %v912_v39 }
 0x1cd   :  { %914 = vmatprep.subr.bf16.mxu1 %v1156_v1 }
 0x1d0   :  { %916 = vmatpush3.bf16.msra.mxu1 %v915_v43 }
 0x1d1   :  { %917 = vmatprep.subr.bf16.mxu1 %v1156_v1 }
 0x1d4   :  { %919 = vmatpush3.bf16.msra.mxu1 %v918_v46 }
 0x1d5   :  { %920 = vmatprep.subr.bf16.mxu1 %v1156_v1 }
 0x1d8   :  { %922 = vmatpush3.bf16.msra.mxu1 %v921_v49 }
 0x28e   :  { %v436_v60 = vpop.f32.mrb[0].mxu1  ;;  %v507_v61 = vpop.f32.mrb[2].mxu0 }
 0x28f   :  { %v437_v62 = vadd.f32 %v436_v60, %v353_v56  ;;  %v508_v63 = vadd.f32 %v507_v61, %v361_v57  ;;  %v438_v1 = vpop.f32.mrb[1].mxu1  ;;  %v509_v0 = vpop.f32.mrb[3].mxu0 }
 0x290   :  { %v439_v2 = vadd.f32 %v438_v1, %v357_v58  ;;  %v510_v44 = vadd.f32 %v509_v0, %v365_v59 }
 0x291   :  { %v692_v3 = vmul.f32 -1.442695, %v437_v62 }
 0x292   :  { %v693_v4 = vmul.f32 -1.442695, %v439_v2  ;;  %v694_v5 = vmul.f32 -1.442695, %v510_v44 }
 0x293   :  { %940 = vpow2.f32 %v692_v3 }
 0x294   :  { %942 = vpow2.f32 %v693_v4 }
 0x295   :  { %944 = vpow2.f32 %v694_v5 }
 0x296   :  { %946 = vtanh.f32 %v508_v63 }
 0x29d   :  { %v941_v6 = vpop.eup %940 }
 0x29e   :  { %v943_v7 = vpop.eup %942  ;;  %v515_v9 = vadd.f32 1.0, %v941_v6 }
 0x29f   :  { %v521_v10 = vadd.f32 1.0, %v943_v7  ;;  %v945_v11 = vpop.eup %944 }
 0x2a0   :  { %948 = vrcp.f32 %v515_v9  ;;  %v947_v12 = vpop.eup %946  ;;  %v528_v17 = vadd.f32 1.0, %v945_v11 }
 0x2a1   :  { %950 = vrcp.f32 %v521_v10 }
 0x2a2   :  { %952 = vrcp.f32 %v528_v17 }
 0x2aa   :  { %v949_v14 = vpop.eup %948 }
 0x2ab   :  { %v951_v15 = vpop.eup %950  ;;  %v532_v16 = vmul.f32 %v949_v14, %v947_v12 }
 0x2ac   :  { %v531_v18 = vmul.f32 %v951_v15, %v128_v13  ;;  %v953_v20 = vpop.eup %952 }
 0x2ae   :  { %v533_v19 = vadd.f32 %v532_v16, %v531_v18 }
 0x2b0   :  { %638 = vst [vmem:[#allocation18] sm:$0xff] %v533_v19  ;;  %954 = vtanh.f32 %v533_v19 }
 0x2ba   :  { %v955_v21 = vpop.eup %954 }
 0x2bb   :  { %v535_v22 = vmul.f32 %v955_v21, %v953_v20 }
 0x2bd   :  { %763 = vmatmul.mubr.f32.vlgmr.msra.gmra.mrb[2].mxu1 %v535_v22  ;;  %637 = vst [vmem:[#allocation16] sm:$0xff] %v535_v22 }
 0x2be   :  { %1081 = shalt.err (!%p1078_p6)
}
 0x2bf   :  { %s1082_s17 = scalar_lea.hbm %s1383_s11, 128 }
 0x2c0   :  { %p1083_p7 = scmp.ne.s32.totalorder %s1383_s11, %s1082_s17  ;;  %p1086_p8 = scmp.lt.u32.totalorder %s1082_s17, %s1383_s11 }
 0x2c2   :  { %p1088_p9 = pnand %p1086_p8, %p1083_p7 }
 0x2c4   :  { %1091 = shalt.err (!%p1088_p9)
}
 0x2c5   :  { %658 = dma.vmem_to_hbm [thread:$0]  %s656_s2, 128, %s1383_s11, [#allocation17]  }
 0x2c6   :  { %s1160_s23 = smov [#allocation18]  }
 0x2c7   :  { %s665_s25 = sshll.u32 %s1160_s23, 4  ;;  %s666_s25 = int_to_ptr.vmem [resolvable:$true] %s665_s25 }
 0x2c8   :  { %s1092_s26 = scalar_lea.vmem %s666_s25, 128  ;;  %p1097_p11 = scmp.lt.s32.totalorder %s666_s25, %s666_s25 }
 0x2c9   :  { %p1093_p10 = scmp.ne.s32.totalorder %s666_s25, %s1092_s26  ;;  %p1098_p12 = scmp.lt.s32.totalorder %s1092_s26, %s1092_s26 }
 0x2cb   :  { %p1099_p13 = por %p1098_p12, %p1097_p11 }
 0x2cd   :  { %p1100_p0 = pnand %p1099_p13, %p1093_p10 }
 0x2cf   :  { %1103 = shalt.err (!%p1100_p0)
}
 0x2d0   :  { %s1104_s27 = scalar_lea.hbm %s1384_s12, 128 }
 0x2d1   :  { %p1105_p1 = scmp.ne.s32.totalorder %s1384_s12, %s1104_s27  ;;  %p1108_p2 = scmp.lt.u32.totalorder %s1104_s27, %s1384_s12 }
 0x2d3   :  { %p1110_p3 = pnand %p1108_p2, %p1105_p1 }
 0x2d5   :  { %1113 = shalt.err (!%p1110_p3)
}
 0x2d6   :  { %668 = dma.vmem_to_hbm [thread:$0]  %s666_s25, 128, %s1384_s12, [#allocation17]  }
 0x2d7   :  { %p118_p4 = scmp.lt.s32.totalorder %s1372_s0, 8  ;;  %s1161_s16 = smov [#allocation15]  }
 0x2d8   :  { %s645_s17 = sshll.u32 %s1161_s16, 4  ;;  %s646_s17 = int_to_ptr.vmem [resolvable:$true] %s645_s17 }
 0x2d9   :  { %s1386_s0 = smov (!%p118_p4, %s1372_s0), 8  ;;  %s1114_s12 = scalar_lea.vmem %s646_s17, 128 }
 0x2da   :  { %s120_s15 = scalar_lea.vmem %s1381_s9, %s1386_s0  ;;  %p1115_p5 = scmp.ne.s32.totalorder %s646_s17, %s1114_s12 }
 0x2db   :  { %v695_v23 = vld [vmem:[%s120_s15] ss:$0 sm:$0xff]  ;;  %p1119_p6 = scmp.lt.s32.totalorder %s646_s17, %s646_s17  ;;  %p1120_p7 = scmp.lt.s32.totalorder %s1114_s12, %s1114_s12 }
 0x2dd   :  { %p1121_p8 = por %p1120_p7, %p1119_p6 }
 0x2df   :  { %p1122_p9 = pnand %p1121_p8, %p1115_p5 }
 0x390   :  { %v625_v24 = vpop.f32.mrb[2].mxu1 }
 0x391   :  { %v626_v25 = vadd.f32 %v695_v23, %v625_v24  ;;  %v764_v26 = vpop.f32.mrb[3].mxu1 }
 0x393   :  { %956 = vtanh.f32 %v626_v25 }
 0x39d   :  { %v957_v27 = vpop.eup %956 }
 0x39e   :  { %v630_v28 = vmul.f32 2.5, %v957_v27 }
 0x3a0   :  { %631 = vst [vmem:[#allocation15] sm:$0xff] %v630_v28 }
 0x3a1   :  { %1125 = shalt.err (!%p1122_p9)
}
 0x3a2   :  { %s1126_s9 = scalar_lea.hbm %s1382_s10, 128 }
 0x3a3   :  { %p1127_p10 = scmp.ne.s32.totalorder %s1382_s10, %s1126_s9  ;;  %p1130_p11 = scmp.lt.u32.totalorder %s1126_s9, %s1382_s10 }
 0x3a5   :  { %p1132_p12 = pnand %p1130_p11, %p1127_p10 }
 0x3a7   :  { %1135 = shalt.err (!%p1132_p12)
}
 0x3a8   :  { %648 = dma.vmem_to_hbm [thread:$0]  %s646_s17, 128, %s1382_s10, [#allocation8]  }
 0x3a9   :  { %1142 = dma.done.wait [#allocation8], 128  }
 0x3aa   :  { %1143 = vsyncadd [#allocation8], 4294967168 }
 0x3ab   :  { %1144 = dma.done.wait [#allocation17], 256  }
 0x3ac   :  { %1145 = vsyncadd [#allocation17], 4294967040 }
 0x3ad   :  { %678 = vsyncpa [#allocation7], 1 }
 0x3ae   :  { %679 = vsyncpa [#allocation10], 1 }
 0x3af   :  { %680 = vsyncpa [#allocation13], 1 }
 0x3b0   :  { %681 = vsyncpa [#allocation8], 1 }
 0x3b1   :  { %682 = vsyncpa [#allocation17], 1 }

</bundles_post_ra>
